<compile_context>
chip_gen: v6e
topology: v6e:2x2x1
jax: 0.10.0
libtpu: 0.0.40
codegen_flags: <defaults>
</compile_context>

<pallas_src>
import functools
import math

import jax
import jax.numpy as jnp
from jax import lax
from jax.experimental import pallas as pl
from jax.experimental.pallas import tpu as pltpu

LANES = 128                      # vreg lane width
SUBLANES = 8                     # vreg sublane count
CHUNK_ELEMS = SUBLANES * LANES   # 1024 elements = one (8,128) f32 vreg
MAX_BLOCK_ROWS = 8192            # (8192,128) f32 = 4 MiB / input / pipeline buffer
MAX_BLOCK_ROWS_V7X = 16384       # v7x: 3.2 TB/s HBM -> bigger steps amortize overhead
CHUNK_ROWS = 256                 # in-kernel accumulation sub-chunk (bounds VMEM temps)
VMEM_LIMIT_BYTES = 48 * 1024 * 1024   # covers 2 inputs x 2 bufs at the largest block


def _chip_config():
    """Per-generation tuning: (max_block_rows, num_splits, core_parallel_sem)."""
    try:
        kind = jax.devices()[0].device_kind.lower()
    except Exception:
        kind = ""
    if "v7" in kind or "7x" in kind:
        core_par = getattr(pltpu, "CORE_PARALLEL", None)
        if core_par is not None:
            return MAX_BLOCK_ROWS_V7X, 2, core_par
        return MAX_BLOCK_ROWS_V7X, 1, None
    # v5e / v6e (and anything unrecognized): single TensorCore -> no split.
    return MAX_BLOCK_ROWS, 1, None


def _mse_kernel(p_ref, t_ref, o_ref, *, block_rows, num_blocks, blocks_per_split,
                last_block_rows, needs_mask, split_axis):
    """Accumulate sum((p - t)^2) of one (block_rows,128) tile into a resident
    (8,128) partial-sum output block (one block per TensorCore split)."""
    if split_axis:
        c = pl.program_id(0)            # TensorCore split (CORE_PARALLEL on v7x)
        i = pl.program_id(1)            # sequential reduction axis
        g = c * blocks_per_split + i    # logical block id
    else:
        i = pl.program_id(0)
        g = i

    @pl.when(i == 0)
    def _():
        o_ref[...] = jnp.zeros_like(o_ref)

    if needs_mask:
        # Rows of this tile carrying real data.  Handles the ragged last block
        # and (odd block count under the 2-way split) fully-duplicated clamped
        # blocks.  Pure int32 scalar compares, no element-index multiplies.
        rows_valid = jnp.where(
            g >= num_blocks, 0,
            jnp.where(g == num_blocks - 1, last_block_rows, block_rows),
        ).astype(jnp.int32)

    def chunk_sum(r0, rows):
        p = p_ref[pl.ds(r0, rows), :].astype(jnp.float32)
        t = t_ref[pl.ds(r0, rows), :].astype(jnp.float32)
        d = p - t
        if needs_mask:
            # Mask BEFORE squaring: stale VMEM past the DMA'd region (possibly
            # NaN/Inf) is selected away and can never reach the accumulator.
            # Interior blocks see rows_valid == block_rows -> pass-through.
            row_ids = r0 + lax.broadcasted_iota(jnp.int32, (rows, LANES), 0)
            d = jnp.where(row_ids < rows_valid, d, 0.0)
        sq = d * d
        # VPU-only add tree keeping the (8,128) vreg structure (no XLU).
        return jnp.sum(sq.reshape(-1, SUBLANES, LANES), axis=0)

    chunk_rows = min(CHUNK_ROWS, block_rows)
    n_full = block_rows // chunk_rows
    rem_rows = block_rows - n_full * chunk_rows     # multiple of 8

    def body(j, acc):
        r0 = pl.multiple_of(j * chunk_rows, chunk_rows)
        return acc + chunk_sum(r0, chunk_rows)

    acc = lax.fori_loop(0, n_full, body,
                        jnp.zeros((SUBLANES, LANES), jnp.float32),
                        unroll=math.gcd(n_full, 8))
    if rem_rows:
        acc = acc + chunk_sum(n_full * chunk_rows, rem_rows)

    o_ref[...] += acc


def _mse_loss_impl(pred, target):
    """Equivalent of the PyTorch module: sum((pred-target)^2) / pred.numel()."""
    assert pred.shape == target.shape, "pred/target must have the same shape"
    n = int(pred.size)

    p_flat = jnp.ravel(pred)
    t_flat = jnp.ravel(target)

    m = (n // CHUNK_ELEMS) * CHUNK_ELEMS        # largest multiple of 1024
    if m == 0:
        # Tiny inputs (< one (8,128) chunk): XLA's fused reduction beats kernel
        # dispatch + pipeline prologue, and avoids sub-tile BlockSpec issues.
        d = p_flat.astype(jnp.float32) - t_flat.astype(jnp.float32)
        return jnp.sum(d * d) / jnp.float32(n)

    if m != n:
        # Ragged tail (< 1024 elements) handled with plain jnp; the kernel
        # streams the aligned prefix.  No full-array jnp.pad copy.
        dt = p_flat[m:].astype(jnp.float32) - t_flat[m:].astype(jnp.float32)
        tail_sum = jnp.sum(dt * dt)
        p_head, t_head = p_flat[:m], t_flat[:m]
    else:
        tail_sum = jnp.float32(0.0)
        p_head, t_head = p_flat, t_flat

    rows = m // LANES                            # multiple of SUBLANES
    p2 = p_head.reshape(rows, LANES)
    t2 = t_head.reshape(rows, LANES)

    max_block_rows, num_splits, core_parallel = _chip_config()
    block_rows = min(max_block_rows, rows)       # multiple of 8 (or == full dim)
    num_blocks = pl.cdiv(rows, block_rows)
    if num_blocks < 2:
        num_splits = 1                           # nothing to shard across cores
    blocks_per_split = pl.cdiv(num_blocks, num_splits)
    last_block_rows = rows - (num_blocks - 1) * block_rows
    needs_mask = (last_block_rows != block_rows or
                  num_splits * blocks_per_split != num_blocks)

    kernel = functools.partial(
        _mse_kernel,
        block_rows=block_rows,
        num_blocks=num_blocks,
        blocks_per_split=blocks_per_split,
        last_block_rows=last_block_rows,
        needs_mask=needs_mask,
        split_axis=(num_splits > 1),
    )

    if num_splits > 1:
        grid = (num_splits, blocks_per_split)

        # Clamp so trailing duplicate blocks (odd block count) never DMA out of
        # bounds; the in-kernel mask zeroes their contribution.
        def in_map(c, i):
            return (jnp.minimum(c * blocks_per_split + i, num_blocks - 1), 0)

        out_map = lambda c, i: (c, 0)
        semantics = (core_parallel, "arbitrary")
    else:
        grid = (num_blocks,)
        in_map = lambda i: (i, 0)
        out_map = lambda i: (0, 0)
        semantics = ("arbitrary",)

    partials = pl.pallas_call(
        kernel,
        out_shape=jax.ShapeDtypeStruct((num_splits * SUBLANES, LANES), jnp.float32),
        grid_spec=pltpu.PrefetchScalarGridSpec(
            num_scalar_prefetch=0,
            grid=grid,
            in_specs=[
                pl.BlockSpec((block_rows, LANES), in_map),
                pl.BlockSpec((block_rows, LANES), in_map),
            ],
            out_specs=pl.BlockSpec((SUBLANES, LANES), out_map),
        ),
        compiler_params=pltpu.CompilerParams(
            dimension_semantics=semantics,
            vmem_limit_bytes=VMEM_LIMIT_BYTES,
        ),
    )(p2, t2)

    # Single final cross-lane/sublane reduce + divide by the ORIGINAL N.
    return (jnp.sum(partials) + tail_sum) / jnp.float32(n)


mse_loss = jax.jit(_mse_loss_impl)


if __name__ == "__main__":
    key = jax.random.PRNGKey(0)
    k1, k2, k3, k4, k5, k6, k7, k8 = jax.random.split(key, 8)

    def ref_loss(p, t):
        d = p.astype(jnp.float32) - t.astype(jnp.float32)
        return jnp.sum(d * d) / p.size

    # Primary test: the module's small NCHW-ish shape (single-block kernel path).
    pred = jax.random.normal(k1, (2, 4, 16, 16), dtype=jnp.float32)
    target = jax.random.normal(k2, (2, 4, 16, 16), dtype=jnp.float32)
    loss = mse_loss(pred, target)
    jax.block_until_ready(loss)
    assert bool(jnp.allclose(loss, ref_loss(pred, target), rtol=1e-5, atol=1e-5)), (
        loss, ref_loss(pred, target))

    # Ragged size (not a multiple of 1024): kernel head + jnp tail, no pad copy.
    p2a = jax.random.normal(k3, (3, 1000, 117), dtype=jnp.float32)
    t2a = jax.random.normal(k4, (3, 1000, 117), dtype=jnp.float32)
    l2 = mse_loss(p2a, t2a)
    jax.block_until_ready(l2)
    assert bool(jnp.allclose(l2, ref_loss(p2a, t2a), rtol=1e-5, atol=1e-5)), (
        l2, ref_loss(p2a, t2a))

    # Multi-block path with a ragged last block: exercises the in-kernel row
    # mask (and, on v7x, the 2-way CORE_PARALLEL split incl. duplicate clamp).
    p3a = jax.random.normal(k5, (20, 250, 1024), dtype=jnp.float32)
    t3a = jax.random.normal(k6, (20, 250, 1024), dtype=jnp.float32)
    l3 = mse_loss(p3a, t3a)
    jax.block_until_ready(l3)
    assert bool(jnp.allclose(l3, ref_loss(p3a, t3a), rtol=1e-5, atol=1e-5)), (
        l3, ref_loss(p3a, t3a))

    # Tiny-input fast path (below one (8,128) chunk, no kernel launch).
    p4a = jax.random.normal(k7, (5, 7), dtype=jnp.float32)
    t4a = jax.random.normal(k8, (5, 7), dtype=jnp.float32)
    l4 = mse_loss(p4a, t4a)
    jax.block_until_ready(l4)
    assert bool(jnp.allclose(l4, ref_loss(p4a, t4a), rtol=1e-5, atol=1e-5)), (
        l4, ref_loss(p4a, t4a))

    print("KERNEL_OK")
</pallas_src>

<mosaic_0001>
module attributes {stable_mosaic.version = 11 : i64} {
  func.func @_mse_kernel(%arg0: i32, %arg1: memref<16x128xf32, #tpu.memory_space<vmem>>, %arg2: memref<16x128xf32, #tpu.memory_space<vmem>>, %arg3: memref<8x128xf32, #tpu.memory_space<vmem>>) attributes {dimension_semantics = [#tpu.dimension_semantics<arbitrary>], iteration_bounds = array<i64: 1>, scalar_prefetch = 0 : i64, scratch_operands = 0 : i64, tpu.core_type = #tpu.core_type<tc>, window_params = [{transform_indices = @transform_0, window_bounds = array<i64: 16, 128>}, {transform_indices = @transform_1, window_bounds = array<i64: 16, 128>}, {pipeline_mode = #tpu.pipeline_mode<synchronous>, transform_indices = @transform_2, window_bounds = array<i64: 8, 128>}]} {
    %c0_i32 = arith.constant 0 : i32
    %0 = arith.cmpi eq, %arg0, %c0_i32 : i32
    %1 = arith.extui %0 : i1 to i32
    %c0_i32_0 = arith.constant 0 : i32
    %2 = arith.cmpi ne, %1, %c0_i32_0 : i32
    scf.if %2 {
      %cst_8 = arith.constant 0.000000e+00 : f32
      %18 = vector.broadcast %cst_8 : f32 to vector<8x128xf32>
      %c0_9 = arith.constant 0 : index
      %c0_10 = arith.constant 0 : index
      %19 = vector.load %arg3[%c0_9, %c0_10] : memref<8x128xf32, #tpu.memory_space<vmem>>, vector<8x128xf32>
      tpu.vector_store %arg3[%c0_9, %c0_10], %18 {strides = array<i32>} : memref<8x128xf32, #tpu.memory_space<vmem>>, vector<8x128xf32>,
    } else {
    }
    %cst = arith.constant 0.000000e+00 : f32
    %3 = vector.broadcast %cst : f32 to vector<8x128xf32>
    %c0_i32_1 = arith.constant 0 : i32
    %c16_i32 = arith.constant 16 : i32
    %4 = arith.muli %c0_i32_1, %c16_i32 : i32
    %5 = tpu.assume_multiple %4, 16 : i32
    %6 = arith.index_cast %5 : i32 to index
    %c0 = arith.constant 0 : index
    %7 = vector.load %arg1[%6, %c0] : memref<16x128xf32, #tpu.memory_space<vmem>>, vector<16x128xf32>
    %8 = arith.index_cast %5 : i32 to index
    %c0_2 = arith.constant 0 : index
    %9 = vector.load %arg2[%8, %c0_2] : memref<16x128xf32, #tpu.memory_space<vmem>>, vector<16x128xf32>
    %10 = arith.subf %7, %9 : vector<16x128xf32>
    %11 = arith.mulf %10, %10 : vector<16x128xf32>
    %12 = vector.shape_cast %11 : vector<16x128xf32> to vector<2x8x128xf32>
    %cst_3 = arith.constant dense<0.000000e+00> : vector<8x128xf32>
    %13 = vector.multi_reduction <add>, %12, %cst_3 [0] : vector<2x8x128xf32> to vector<8x128xf32>
    %14 = arith.addf %3, %13 : vector<8x128xf32>
    %c1_i32 = arith.constant 1 : i32
    %c0_4 = arith.constant 0 : index
    %c0_5 = arith.constant 0 : index
    %15 = vector.load %arg3[%c0_4, %c0_5] : memref<8x128xf32, #tpu.memory_space<vmem>>, vector<8x128xf32>
    %16 = arith.addf %15, %14 : vector<8x128xf32>
    %c0_6 = arith.constant 0 : index
    %c0_7 = arith.constant 0 : index
    %17 = vector.load %arg3[%c0_6, %c0_7] : memref<8x128xf32, #tpu.memory_space<vmem>>, vector<8x128xf32>
    tpu.vector_store %arg3[%c0_6, %c0_7], %16 {strides = array<i32>} : memref<8x128xf32, #tpu.memory_space<vmem>>, vector<8x128xf32>,
    return
  }
  func.func @transform_0(%arg0: i32) -> (i32, i32) {
    %c0_i32 = arith.constant 0 : i32
    %c0_i32_0 = arith.constant 0 : i32
    return %arg0, %c0_i32 : i32, i32
  }
  func.func @transform_1(%arg0: i32) -> (i32, i32) {
    %c0_i32 = arith.constant 0 : i32
    %c0_i32_0 = arith.constant 0 : i32
    return %arg0, %c0_i32 : i32, i32
  }
  func.func @transform_2(%arg0: i32) -> (i32, i32) {
    %c0_i32 = arith.constant 0 : i32
    %c0_i32_0 = arith.constant 0 : i32
    %c0_i32_1 = arith.constant 0 : i32
    return %c0_i32, %c0_i32_0 : i32, i32
  }
}

</mosaic_0001>

<bundles_post_ra>
// kernel: _mse_loss_impl.1
= control target key start
LH: loop header
LB: loop body
LE: loop exit
PB: predicated region body
PF: predicated region fallthrough
CT: control target
= control target key end

     0   :  { %s64_s0 = inlined_call_operand.vmem [shape: f32[16,128], index: 0, kind: input, shape index: {}]   ;;  %s65_s1 = inlined_call_operand.vmem [shape: f32[16,128], index: 1, kind: input, shape index: {}]   ;;  %s66_s2 = inlined_call_operand.vmem [shape: f32[8,128], index: 2, kind: output, shape index: {}]  }
   0x1   :  { %v16_v0 = vld [vmem:[%s64_s0] sm:$0xff]  ;;  %v17_v1 = vld [vmem:[%s64_s0 + $0x8] sm:$0xff] }
   0x2   :  { %v18_v2 = vld [vmem:[%s65_s1] sm:$0xff]  ;;  %v19_v3 = vld [vmem:[%s65_s1 + $0x8] sm:$0xff] }
   0x3   :  { %v20_v4 = vsub.f32 %v16_v0, %v18_v2  ;;  %v21_v5 = vsub.f32 %v17_v1, %v19_v3 }
   0x5   :  { %v22_v6 = vmul.f32 %v20_v4, %v20_v4  ;;  %v23_v7 = vmul.f32 %v21_v5, %v21_v5 }
   0x7   :  { %v24_v8 = vadd.f32 %v23_v7, %v22_v6 }
   0x9   :  { %28 = vst [vmem:[%s66_s2] sm:$0xff] %v24_v8 }

</bundles_post_ra>
